<compile_context>
chip_gen: v5e
topology: v5e:2x2
jax: 0.10.0
libtpu: 0.0.40
codegen_flags: <defaults>
</compile_context>

<pallas_src>
import math

import jax
import jax.numpy as jnp
from jax.experimental import pallas as pl
from jax.experimental.pallas import tpu as pltpu


def _round_up(n, m):
    return (n + m - 1) // m * m


def _make_kernel(feature_dim, class_num):
    F, C = feature_dim, class_num

    def kernel(x_ref, w1_ref, b1_ref, w2_ref, b2_ref, out_ref):
        cdt = w1_ref.dtype                                   # compute dtype (bf16)

        # ---- fused first layer: (TB, D) @ (D, 2H), f32 accumulate, ReLU
        x = x_ref[...].astype(cdt)                           # in-kernel cast (free filler)
        h = jnp.dot(x, w1_ref[...], preferred_element_type=jnp.float32)
        h = jnp.maximum(h + b1_ref[...], 0.0)                # f32 (TB, 2H)

        # ---- fused block-diagonal second layer: (TB, 2H) @ (2H, P)
        #      lanes [0:F) = instance head z, lanes [F:F+C) = cluster logits
        y = jnp.dot(h.astype(cdt), w2_ref[...], preferred_element_type=jnp.float32)
        y = y + b2_ref[...]                                  # f32 (TB, P)

        P = out_ref.shape[1]
        lane = jax.lax.broadcasted_iota(jnp.int32, (1, P), 1)
        z_mask = lane < F
        c_mask = (lane >= F) & (lane < F + C)

        # ---- instance head: L2 normalize over its own lanes
        #      (torch normalize: denom = max(||z||, 1e-12))
        sumsq = jnp.sum(jnp.where(z_mask, y * y, 0.0), axis=1, keepdims=True)
        z = y * jax.lax.rsqrt(jnp.maximum(sumsq, 1e-24))

        # ---- cluster head: softmax over its own lanes
        logits = jnp.where(c_mask, y, jnp.float32(-1e30))
        m = jnp.max(logits, axis=1, keepdims=True)
        e = jnp.where(c_mask, jnp.exp(logits - m), 0.0)
        denom = jnp.sum(e, axis=1, keepdims=True)
        c = e * pl.reciprocal(denom, approx=True)

        # packed [z | c | 0] output
        out_ref[...] = jnp.where(z_mask, z, c).astype(out_ref.dtype)

    return kernel


def prepare_params(params, compute_dtype=jnp.bfloat16):
    """One-time packing of the PyTorch-style parameter list into the fused /
    block-diagonal layout the kernel consumes.  Call once, reuse forever."""
    (w1i, b1i, w2i, b2i, w1c, b1c, w2c, b2c) = params
    D, H = w1i.shape
    F = w2i.shape[1]
    C = w2c.shape[1]
    P = _round_up(F + C, 128)

    # fused first layer: [W1_inst | W1_clus]
    W1 = jnp.concatenate([w1i, w1c], axis=1).astype(compute_dtype)       # (D, 2H)
    B1 = jnp.concatenate([b1i, b1c], axis=1).astype(jnp.float32)         # (1, 2H)

    # block-diagonal second layer: rows 0:H x lanes 0:F = W2i,
    #                              rows H:2H x lanes F:F+C = W2c
    W2 = jnp.zeros((2 * H, P), compute_dtype)
    W2 = W2.at[:H, :F].set(w2i.astype(compute_dtype))
    W2 = W2.at[H:, F:F + C].set(w2c.astype(compute_dtype))
    B2 = jnp.zeros((1, P), jnp.float32)
    B2 = B2.at[:, :F].set(b2i.astype(jnp.float32))
    B2 = B2.at[:, F:F + C].set(b2c.astype(jnp.float32))

    W1, B1, W2, B2 = jax.device_put((W1, B1, W2, B2))
    return (W1, B1, W2, B2, F, C)


def modified_network_forward(x, packed, tb=1024, out_dtype=jnp.float32):
    """x: (B, input_dim) f32.  packed: output of prepare_params.
    Returns (z, c) with z (B, feature_dim) unit-norm rows and c (B, class_num)
    softmax rows."""
    W1, B1, W2, B2, F, C = packed
    B, D = x.shape
    H2 = W1.shape[1]                     # 2 * hidden
    P = W2.shape[1]                      # round_up(F + C, 128)

    # ---- batch tile selection: big tiles, minimal padding, and >= 2 grid
    #      steps when B > 8 so v7x megacore can split the batch axis.
    n_tiles = pl.cdiv(B, tb)
    if B > 8:
        n_tiles = max(n_tiles, 2)
    TB = _round_up(pl.cdiv(B, n_tiles), 8)
    B_pad = _round_up(B, TB)
    x_p = x if B_pad == B else jnp.pad(x, ((0, B_pad - B), (0, 0)))
    grid = (B_pad // TB,)

    cost = pl.CostEstimate(
        flops=2 * B_pad * (D * H2 + H2 * P),
        transcendentals=B_pad * (C + 2),
        bytes_accessed=(x_p.nbytes + W1.nbytes + B1.nbytes + W2.nbytes +
                        B2.nbytes + B_pad * P * jnp.dtype(out_dtype).itemsize),
    )

    out = pl.pallas_call(
        _make_kernel(F, C),
        out_shape=jax.ShapeDtypeStruct((B_pad, P), out_dtype),
        grid=grid,
        in_specs=[
            pl.BlockSpec((TB, D), lambda i: (i, 0)),        # x: blocked over rows
            pl.BlockSpec((D, H2), lambda i: (0, 0)),        # weights: VMEM-resident
            pl.BlockSpec((1, H2), lambda i: (0, 0)),
            pl.BlockSpec((H2, P), lambda i: (0, 0)),
            pl.BlockSpec((1, P), lambda i: (0, 0)),
        ],
        out_specs=pl.BlockSpec((TB, P), lambda i: (i, 0)),
        compiler_params=pltpu.CompilerParams(
            dimension_semantics=("parallel",),
            vmem_limit_bytes=32 * 1024 * 1024),
        cost_estimate=cost,
    )(x_p, W1, B1, W2, B2)

    z = out[:B, :F]
    c = out[:B, F:F + C]
    return z, c


def init_params(key, input_dim, feature_dim, class_num, hidden=128):
    """Kaiming-normal (fan_in, gain=sqrt(2)) weights, zero biases — matches
    nn.init.kaiming_normal_ on nn.Linear; biases set to 0.  Weights stored as
    (in, out) so the kernel does x @ W."""
    ks = jax.random.split(key, 4)

    def kaiming(k, fan_in, fan_out):
        std = math.sqrt(2.0 / fan_in)
        return jax.random.normal(k, (fan_in, fan_out), dtype=jnp.float32) * std

    w1i = kaiming(ks[0], input_dim, hidden)
    b1i = jnp.zeros((1, hidden), jnp.float32)
    w2i = kaiming(ks[1], hidden, feature_dim)
    b2i = jnp.zeros((1, feature_dim), jnp.float32)

    w1c = kaiming(ks[2], input_dim, hidden)
    b1c = jnp.zeros((1, hidden), jnp.float32)
    w2c = kaiming(ks[3], hidden, class_num)
    b2c = jnp.zeros((1, class_num), jnp.float32)
    return (w1i, b1i, w2i, b2i, w1c, b1c, w2c, b2c)


def reference_forward(x, params, compute_dtype=jnp.bfloat16):
    """Pure-JAX reference using the same bf16-matmul / f32-accumulate recipe,
    structured exactly like the PyTorch module (two separate branches)."""
    (w1i, b1i, w2i, b2i, w1c, b1c, w2c, b2c) = params

    def mm(a, w):
        return jnp.dot(a.astype(compute_dtype), w.astype(compute_dtype),
                       preferred_element_type=jnp.float32)

    h_i = jnp.maximum(mm(x, w1i) + b1i, 0.0)
    z = mm(h_i, w2i) + b2i
    z = z * jax.lax.rsqrt(jnp.maximum(jnp.sum(z * z, axis=1, keepdims=True), 1e-24))

    h_c = jnp.maximum(mm(x, w1c) + b1c, 0.0)
    logits = mm(h_c, w2c) + b2c
    c = jax.nn.softmax(logits, axis=1)
    return z, c


if __name__ == "__main__":
    batch = 8
    input_dim = 32
    feature_dim = 16
    class_num = 10

    key = jax.random.PRNGKey(0)
    kx, kp = jax.random.split(key)
    x = jax.random.normal(kx, (batch, input_dim), dtype=jnp.float32)
    params = init_params(kp, input_dim, feature_dim, class_num)

    packed = prepare_params(params)                # one-time packing
    jax.block_until_ready(packed[:4])

    z, c = modified_network_forward(x, packed)
    jax.block_until_ready((z, c))

    assert z.shape == (batch, feature_dim)
    assert c.shape == (batch, class_num)

    z_ref, c_ref = reference_forward(x, params)
    assert jnp.allclose(z, z_ref, atol=1e-2), "instance head mismatch"
    assert jnp.allclose(c, c_ref, atol=1e-2), "cluster head mismatch"
    assert jnp.allclose(jnp.sum(c, axis=1), 1.0, atol=1e-2), "softmax rows must sum to 1"
    assert jnp.allclose(jnp.sum(z * z, axis=1), 1.0, atol=1e-2), "z rows must be unit norm"

    print("KERNEL_OK")
</pallas_src>

<mosaic_0001>
module attributes {stable_mosaic.version = 11 : i64} {
  func.func @kernel(%arg0: i32, %arg1: memref<8x32xf32, #tpu.memory_space<vmem>>, %arg2: memref<32x256xbf16, #tpu.memory_space<vmem>>, %arg3: memref<1x256xf32, #tpu.memory_space<vmem>>, %arg4: memref<256x128xbf16, #tpu.memory_space<vmem>>, %arg5: memref<1x128xf32, #tpu.memory_space<vmem>>, %arg6: memref<8x128xf32, #tpu.memory_space<vmem>>) attributes {dimension_semantics = [#tpu.dimension_semantics<parallel>], iteration_bounds = array<i64: 1>, scalar_prefetch = 0 : i64, scratch_operands = 0 : i64, tpu.core_type = #tpu.core_type<tc>, window_params = [{transform_indices = @transform_0, window_bounds = array<i64: 8, 32>}, {pipeline_mode = #tpu.pipeline_mode<synchronous>, transform_indices = @transform_1, window_bounds = array<i64: 32, 256>}, {pipeline_mode = #tpu.pipeline_mode<synchronous>, transform_indices = @transform_2, window_bounds = array<i64: 1, 256>}, {pipeline_mode = #tpu.pipeline_mode<synchronous>, transform_indices = @transform_3, window_bounds = array<i64: 256, 128>}, {pipeline_mode = #tpu.pipeline_mode<synchronous>, transform_indices = @transform_4, window_bounds = array<i64: 1, 128>}, {transform_indices = @transform_5, window_bounds = array<i64: 8, 128>}]} {
    %c0 = arith.constant 0 : index
    %c0_0 = arith.constant 0 : index
    %0 = vector.load %arg1[%c0, %c0_0] : memref<8x32xf32, #tpu.memory_space<vmem>>, vector<8x32xf32>
    %1 = arith.truncf %0 : vector<8x32xf32> to vector<8x32xbf16>
    %c0_1 = arith.constant 0 : index
    %c0_2 = arith.constant 0 : index
    %2 = vector.load %arg2[%c0_1, %c0_2] : memref<32x256xbf16, #tpu.memory_space<vmem>>, vector<32x256xbf16>
    %cst = arith.constant dense<0.000000e+00> : vector<8x256xf32>
    %3 = tpu.matmul %1, %2, %cst {dimension_numbers = #tpu.dot_dimension_numbers<[1], [0], [0], [1], [0, 0, 1, 1], [], []>} : vector<8x32xbf16>, vector<32x256xbf16>, vector<8x256xf32> -> vector<8x256xf32>
    %c0_3 = arith.constant 0 : index
    %c0_4 = arith.constant 0 : index
    %4 = vector.load %arg3[%c0_3, %c0_4] : memref<1x256xf32, #tpu.memory_space<vmem>>, vector<1x256xf32>
    %5 = vector.broadcast %4 : vector<1x256xf32> to vector<8x256xf32>
    %6 = arith.addf %3, %5 : vector<8x256xf32>
    %cst_5 = arith.constant 0.000000e+00 : f32
    %7 = vector.broadcast %cst_5 : f32 to vector<8x256xf32>
    %8 = arith.maximumf %6, %7 : vector<8x256xf32>
    %9 = arith.truncf %8 : vector<8x256xf32> to vector<8x256xbf16>
    %c0_6 = arith.constant 0 : index
    %c0_7 = arith.constant 0 : index
    %10 = vector.load %arg4[%c0_6, %c0_7] : memref<256x128xbf16, #tpu.memory_space<vmem>>, vector<256x128xbf16>
    %cst_8 = arith.constant dense<0.000000e+00> : vector<8x128xf32>
    %11 = tpu.matmul %9, %10, %cst_8 {dimension_numbers = #tpu.dot_dimension_numbers<[1], [0], [0], [1], [0, 0, 1, 1], [], []>} : vector<8x256xbf16>, vector<256x128xbf16>, vector<8x128xf32> -> vector<8x128xf32>
    %c0_9 = arith.constant 0 : index
    %c0_10 = arith.constant 0 : index
    %12 = vector.load %arg5[%c0_9, %c0_10] : memref<1x128xf32, #tpu.memory_space<vmem>>, vector<1x128xf32>
    %13 = vector.broadcast %12 : vector<1x128xf32> to vector<8x128xf32>
    %14 = arith.addf %11, %13 : vector<8x128xf32>
    %15 = tpu.iota {dimensions = array<i32: 1>} : vector<1x128xi32>
    %c16_i32 = arith.constant 16 : i32
    %16 = vector.broadcast %c16_i32 : i32 to vector<1x128xi32>
    %17 = arith.cmpi slt, %15, %16 : vector<1x128xi32>
    %c16_i32_11 = arith.constant 16 : i32
    %18 = vector.broadcast %c16_i32_11 : i32 to vector<1x128xi32>
    %19 = arith.cmpi sge, %15, %18 : vector<1x128xi32>
    %c26_i32 = arith.constant 26 : i32
    %20 = vector.broadcast %c26_i32 : i32 to vector<1x128xi32>
    %21 = arith.cmpi slt, %15, %20 : vector<1x128xi32>
    %22 = arith.andi %19, %21 : vector<1x128xi1>
    %23 = arith.mulf %14, %14 : vector<8x128xf32>
    %cst_12 = arith.constant 0.000000e+00 : f32
    %24 = vector.shape_cast %17 : vector<1x128xi1> to vector<1x128xi1>
    %25 = vector.broadcast %24 : vector<1x128xi1> to vector<8x128xi1>
    %26 = vector.broadcast %cst_12 : f32 to vector<8x128xf32>
    %27 = arith.select %25, %23, %26 : vector<8x128xi1>, vector<8x128xf32>
    %cst_13 = arith.constant dense<0.000000e+00> : vector<8xf32>
    %28 = vector.multi_reduction <add>, %27, %cst_13 [1] : vector<8x128xf32> to vector<8xf32>
    %29 = vector.shape_cast %28 : vector<8xf32> to vector<8x1xf32>
    %cst_14 = arith.constant 1.000000e-24 : f32
    %30 = vector.broadcast %cst_14 : f32 to vector<8x1xf32>
    %31 = arith.maximumf %29, %30 : vector<8x1xf32>
    %32 = math.rsqrt %31 : vector<8x1xf32>
    %33 = vector.broadcast %32 : vector<8x1xf32> to vector<8x128xf32>
    %34 = arith.mulf %14, %33 : vector<8x128xf32>
    %cst_15 = arith.constant -1.000000e+30 : f32
    %35 = vector.shape_cast %22 : vector<1x128xi1> to vector<1x128xi1>
    %36 = vector.broadcast %35 : vector<1x128xi1> to vector<8x128xi1>
    %37 = vector.broadcast %cst_15 : f32 to vector<8x128xf32>
    %38 = arith.select %36, %14, %37 : vector<8x128xi1>, vector<8x128xf32>
    %cst_16 = arith.constant dense<0xFF800000> : vector<8xf32>
    %39 = vector.multi_reduction <maximumf>, %38, %cst_16 [1] : vector<8x128xf32> to vector<8xf32>
    %40 = vector.shape_cast %39 : vector<8xf32> to vector<8x1xf32>
    %41 = vector.broadcast %40 : vector<8x1xf32> to vector<8x128xf32>
    %42 = arith.subf %38, %41 : vector<8x128xf32>
    %43 = math.exp %42 : vector<8x128xf32>
    %cst_17 = arith.constant 0.000000e+00 : f32
    %44 = vector.shape_cast %22 : vector<1x128xi1> to vector<1x128xi1>
    %45 = vector.broadcast %44 : vector<1x128xi1> to vector<8x128xi1>
    %46 = vector.broadcast %cst_17 : f32 to vector<8x128xf32>
    %47 = arith.select %45, %43, %46 : vector<8x128xi1>, vector<8x128xf32>
    %cst_18 = arith.constant dense<0.000000e+00> : vector<8xf32>
    %48 = vector.multi_reduction <add>, %47, %cst_18 [1] : vector<8x128xf32> to vector<8xf32>
    %49 = vector.shape_cast %48 : vector<8xf32> to vector<8x1xf32>
    %50 = tpu.reciprocal %49 {approx = true} : vector<8x1xf32> -> vector<8x1xf32>
    %51 = vector.broadcast %50 : vector<8x1xf32> to vector<8x128xf32>
    %52 = arith.mulf %47, %51 : vector<8x128xf32>
    %53 = vector.shape_cast %17 : vector<1x128xi1> to vector<1x128xi1>
    %54 = vector.broadcast %53 : vector<1x128xi1> to vector<8x128xi1>
    %55 = arith.select %54, %34, %52 : vector<8x128xi1>, vector<8x128xf32>
    %c0_19 = arith.constant 0 : index
    %c0_20 = arith.constant 0 : index
    %56 = vector.load %arg6[%c0_19, %c0_20] : memref<8x128xf32, #tpu.memory_space<vmem>>, vector<8x128xf32>
    tpu.vector_store %arg6[%c0_19, %c0_20], %55 {strides = array<i32>} : memref<8x128xf32, #tpu.memory_space<vmem>>, vector<8x128xf32>,
    return
  }
  func.func @transform_0(%arg0: i32) -> (i32, i32) {
    %c0_i32 = arith.constant 0 : i32
    %c0_i32_0 = arith.constant 0 : i32
    return %arg0, %c0_i32 : i32, i32
  }
  func.func @transform_1(%arg0: i32) -> (i32, i32) {
    %c0_i32 = arith.constant 0 : i32
    %c0_i32_0 = arith.constant 0 : i32
    %c0_i32_1 = arith.constant 0 : i32
    return %c0_i32, %c0_i32_0 : i32, i32
  }
  func.func @transform_2(%arg0: i32) -> (i32, i32) {
    %c0_i32 = arith.constant 0 : i32
    %c0_i32_0 = arith.constant 0 : i32
    %c0_i32_1 = arith.constant 0 : i32
    return %c0_i32, %c0_i32_0 : i32, i32
  }
  func.func @transform_3(%arg0: i32) -> (i32, i32) {
    %c0_i32 = arith.constant 0 : i32
    %c0_i32_0 = arith.constant 0 : i32
    %c0_i32_1 = arith.constant 0 : i32
    return %c0_i32, %c0_i32_0 : i32, i32
  }
  func.func @transform_4(%arg0: i32) -> (i32, i32) {
    %c0_i32 = arith.constant 0 : i32
    %c0_i32_0 = arith.constant 0 : i32
    %c0_i32_1 = arith.constant 0 : i32
    return %c0_i32, %c0_i32_0 : i32, i32
  }
  func.func @transform_5(%arg0: i32) -> (i32, i32) {
    %c0_i32 = arith.constant 0 : i32
    %c0_i32_0 = arith.constant 0 : i32
    return %arg0, %c0_i32 : i32, i32
  }
}

</mosaic_0001>

<bundles_post_ra>
// kernel: tpu_custom_call.1
= control target key start
LH: loop header
LB: loop body
LE: loop exit
PB: predicated region body
PF: predicated region fallthrough
CT: control target
= control target key end

     0   :  { %10 = vsyncpa [#allocation3], 0  ;;  %s668_s0 = inlined_call_operand.hbm [shape: f32[8,32], index: 0, kind: input, shape index: {}]   ;;  %s669_s1 = inlined_call_operand.hbm [shape: bf16[32,256], index: 1, kind: input, shape index: {}]   ;;  %s670_s2 = inlined_call_operand.hbm [shape: f32[1,256], index: 2, kind: input, shape index: {}]   ;;  %s671_s3 = inlined_call_operand.hbm [shape: bf16[256,128], index: 3, kind: input, shape index: {}]   ;;  %s672_s4 = inlined_call_operand.vmem [shape: f32[1,128], index: 4, kind: input, shape index: {}]   ;;  %s673_s5 = inlined_call_operand.hbm [shape: f32[8,128], index: 5, kind: output, shape index: {}]  }
   0x1   :  { %11 = vsyncpa [#allocation6], 0 }
   0x2   :  { %12 = vsyncpa [#allocation9], 0  ;;  %s29_s20 = sshll.u32 %s669_s1, 4  ;;  %s30_s20 = int_to_ptr.hbm [resolvable:$true] %s29_s20 }
   0x3   :  { %13 = vsyncpa [#allocation4], 0  ;;  %s609_s21 = smov [#allocation5]   ;;  %s19_s25 = sshll.u32 %s668_s0, 4  ;;  %s20_s25 = int_to_ptr.hbm [resolvable:$true] %s19_s25 }
   0x4   :  { %s31_s22 = sshll.u32 %s609_s21, 4  ;;  %s610_s26 = smov 128   ;;  %s32_s22 = int_to_ptr.vmem [resolvable:$true] %s31_s22 }
   0x5   :  { %s611_s27 = smov 8   ;;  %s612_s28 = smov [#allocation2]  }
   0x6   :  { %37 = dma.hbm_to_vmem [thread:$0]  %s30_s20, 512, %s32_s22, [#allocation6], %s610_s26, %s610_s26, %s611_s27  }
   0x7   :  { %s21_s29 = sshll.u32 %s612_s28, 4  ;;  %s43_s7 = sshll.u32 %s670_s2, 4  ;;  %s22_s29 = int_to_ptr.vmem [resolvable:$true] %s21_s29  ;;  %s44_s7 = int_to_ptr.hbm [resolvable:$true] %s43_s7 }
   0x8   :  { %24 = dma.hbm_to_vmem [thread:$0]  %s20_s25, 128, %s22_s29, [#allocation3]  }
   0x9   :  { %s53_s9 = sshll.u32 %s671_s3, 4  ;;  %s613_s10 = smov [#allocation7]   ;;  %s54_s9 = int_to_ptr.hbm [resolvable:$true] %s53_s9 }
   0xa   :  { %s45_s11 = sshll.u32 %s613_s10, 4  ;;  %s614_s0 = smov [#allocation8]   ;;  %s46_s11 = int_to_ptr.vmem [resolvable:$true] %s45_s11 }
   0xb   :  { %48 = dma.hbm_to_vmem [thread:$0]  %s44_s7, 32, %s46_s11, [#allocation6]  }
   0xc   :  { %s55_s12 = sshll.u32 %s614_s0, 4  ;;  %s615_s13 = smov 64   ;;  %s56_s12 = int_to_ptr.vmem [resolvable:$true] %s55_s12 }
   0xd   :  { %s616_s14 = smov 4  }
   0xe   :  { %61 = dma.hbm_to_vmem [thread:$0]  %s54_s9, 2048, %s56_s12, [#allocation9], %s615_s13, %s615_s13, %s616_s14  }
   0xf   :  { %601 = dma.done.wait [#allocation3], 128  }
  0x10   :  { %602 = vsyncadd [#allocation3], 4294967168 }
  0x11   :  { %603 = dma.done.wait [#allocation6], 544  }
  0x12   :  { %604 = vsyncadd [#allocation6], 4294966752 }
  0x13   :  { %605 = dma.done.wait [#allocation9], 2048  }
  0x14   :  { %606 = vsyncadd [#allocation9], 4294965248  ;;  %v373_v0 = vld [vmem:[#allocation5 + $0x10] sm:$0xf]  ;;  %v448_v1 = vld [vmem:[#allocation5 + $0x14] sm:$0xf0]  ;;  %v305_v43 = vlaneseq }
  0x15   :  { %v447_v2 = vld [vmem:[#allocation5 + $0x14] sm:$0xf]  ;;  %v374_v3 = vor.u32 %v448_v1, %v373_v0  ;;  %v375_v4 = vld [vmem:[#allocation5 + $0x18] sm:$0xf0]  ;;  %v365_v5 = vld [vmem:[#allocation5] sm:$0xf] }
  0x16   :  { %v446_v6 = vld [vmem:[#allocation5 + $0x4] sm:$0xf0]  ;;  %v378_v7 = vor.u32 %v447_v2, %v375_v4  ;;  %v445_v8 = vld [vmem:[#allocation5 + $0x4] sm:$0xf]  ;;  %v367_v9 = vld [vmem:[#allocation5 + $0x8] sm:$0xf0] }
  0x17   :  { %123 = vmatpush.bf16.msra.mxu0 %v374_v3  ;;  %v366_v10 = vor.u32 %v446_v6, %v365_v5  ;;  %v81_v11 = vld [vmem:[#allocation2] sm:$0xff]  ;;  %v370_v14 = vor.u32 %v445_v8, %v367_v9  ;;  %vm113_vm0 = vcmask 261120   ;;  %v454_v18 = vld [vmem:[#allocation8 + $0x28] sm:$0xff]  ;;  %v453_v20 = vld [vmem:[#allocation8 + $0x20] sm:$0xff]  ;;  %v306_v44 = vand.u32 127, %v305_v43  ;;  %s351_s18 = sshll.u32 %s673_s5, 4  ;;  %s352_s18 = int_to_ptr.hbm [resolvable:$true] %s351_s18 }
  0x18   :  { %v456_v12 = vld [vmem:[#allocation8 + $0x38] sm:$0xff]  ;;  %136 = vmatpush.bf16.msra.mxu1 %v378_v7  ;;  %v455_v15 = vld [vmem:[#allocation8 + $0x30] sm:$0xff]  ;;  %v82_v17 = vpack.c.bf16 %v81_v11, %v81_v11  ;;  %v462_v19 = vld [vmem:[#allocation8 + $0x68] sm:$0xff] }
  0x19   :  { %v464_v13 = vld [vmem:[#allocation8 + $0x78] sm:$0xff]  ;;  %279 = vmatpush.bf16.msra.mxu2 %v456_v12  ;;  %v463_v16 = vld [vmem:[#allocation8 + $0x70] sm:$0xff]  ;;  %v461_v21 = vld [vmem:[#allocation8 + $0x60] sm:$0xff]  ;;  %vm308_vm1 = vcmp.ge.s32.totalorder %v306_v44, 16  ;;  %vm309_vm2 = vcmp.lt.s32.totalorder %v306_v44, 26  ;;  %vm307_vm4 = vcmp.lt.s32.totalorder %v306_v44, 16 }
  0x1a   :  { %292 = vmatpush.bf16.msra.mxu3 %v464_v13  ;;  %v452_v22 = vld [vmem:[#allocation8 + $0x18] sm:$0xff]  ;;  %v451_v24 = vld [vmem:[#allocation8 + $0x10] sm:$0xff]  ;;  %v450_v26 = vld [vmem:[#allocation8 + $0x8] sm:$0xff] }
  0x1b   :  { %124 = vmatpush.bf16.msra.mxu0 %v366_v10  ;;  %v460_v23 = vld [vmem:[#allocation8 + $0x58] sm:$0xff]  ;;  %v459_v25 = vld [vmem:[#allocation8 + $0x50] sm:$0xff]  ;;  %v458_v27 = vld [vmem:[#allocation8 + $0x48] sm:$0xff] }
  0x1c   :  { %137 = vmatpush.bf16.msra.mxu1 %v370_v14  ;;  %v449_v28 = vld [vmem:[#allocation8] sm:$0xff]  ;;  %v87_v30 = vld [vmem:[#allocation7] sm:$0x3]  ;;  %v474_v45 = vld [vmem:[%s672_s4] ss:$0 sm:$0xff]  ;;  %s617_s4 = smov [#allocation10]  }
  0x1d   :  { %280 = vmatpush.bf16.msra.mxu2 %v455_v15  ;;  %v457_v29 = vld [vmem:[#allocation8 + $0x40] sm:$0xff]  ;;  %v89_v31 = vperm.slane %v87_v30, 0  ;;  %v90_v32 = vperm.slane %v87_v30, 1  ;;  %vm310_vm3 = vmand %vm308_vm1, %vm309_vm2  ;;  %s349_s15 = sshll.u32 %s617_s4, 4  ;;  %s350_s15 = int_to_ptr.vmem [resolvable:$true] %s349_s15 }
  0x1e   :  { %293 = vmatpush.bf16.msra.mxu3 %v463_v16  ;;  %379 = vmatmul.msk.bf16.vlgmr.msra.gmra.mxu0 %vm113_vm0, %v82_v17 }
  0x1f   :  { %380 = vmatmul.msk.bf16.vlgmr.msra.gmra.mxu1 %vm113_vm0, %v82_v17 }
  0x21   :  { %281 = vmatpush.bf16.msra.mxu2 %v454_v18 }
  0x22   :  { %294 = vmatpush.bf16.msra.mxu3 %v462_v19 }
  0x25   :  { %282 = vmatpush.bf16.msra.mxu2 %v453_v20 }
  0x26   :  { %295 = vmatpush.bf16.msra.mxu3 %v461_v21 }
  0x29   :  { %283 = vmatpush.bf16.msra.mxu2 %v452_v22 }
  0x2a   :  { %296 = vmatpush.bf16.msra.mxu3 %v460_v23 }
  0x2d   :  { %284 = vmatpush.bf16.msra.mxu2 %v451_v24 }
  0x2e   :  { %297 = vmatpush.bf16.msra.mxu3 %v459_v25 }
  0x31   :  { %285 = vmatpush.bf16.msra.mxu2 %v450_v26 }
  0x32   :  { %298 = vmatpush.bf16.msra.mxu3 %v458_v27 }
  0x35   :  { %286 = vmatpush.bf16.msra.mxu2 %v449_v28 }
  0x36   :  { %299 = vmatpush.bf16.msra.mxu3 %v457_v29 }
  0x9b   :  { %v126_v33 = vpop.f32.mrf.mxu0 }
  0x9c   :  { %v127_v34 = vadd.f32 %v126_v33, %v89_v31  ;;  %v139_v35 = vpop.f32.mrf.mxu1 }
  0x9d   :  { %v140_v36 = vadd.f32 %v139_v35, %v90_v32 }
  0x9e   :  { %v143_v37 = vmax.f32 %v127_v34, 0.0 }
  0x9f   :  { %v144_v38 = vmax.f32 %v140_v36, 0.0 }
  0xa0   :  { %v145_v39 = vpack.c.bf16 %v143_v37, %v143_v37 }
  0xa1   :  { %v146_v40 = vpack.c.bf16 %v144_v38, %v144_v38 }
  0xa2   :  { %287 = vmatmul.bf16.vlgmr.msra.gmra.mxu2 %v145_v39 }
  0xa3   :  { %300 = vmatmul.bf16.vlgmr.msra.gmra.mxu3 %v146_v40  ;;  %v128_v41 = vpop.f32.mrf.mxu0 }
  0xa4   :  { %v141_v42 = vpop.f32.mrf.mxu1 }
 0x125   :  { %v288_v46 = vpop.f32.mrf.mxu2 }
 0x126   :  { %v289_v47 = vadd.f32 %v474_v45, %v288_v46  ;;  %v301_v48 = vpop.f32.mrf.mxu3 }
 0x128   :  { %v302_v49 = vadd.f32 %v301_v48, %v289_v47 }
 0x12a   :  { %v331_v50 = vsel %vm310_vm3, %v302_v49, -1e+30  ;;  %v311_v53 = vmul.f32 %v302_v49, %v302_v49 }
 0x12b   :  { %332 = vmax.xlane.f32.xlu0 %v331_v50 }
 0x12c   :  { %v314_v54 = vsel %vm307_vm4, %v311_v53, 0.0 }
 0x12d   :  { %v290_v51 = vpop.f32.mrf.mxu2 }
 0x12e   :  { %v303_v52 = vpop.f32.mrf.mxu3 }
 0x133   :  { %315 = vadd.xlane.f32.xlu0 %v314_v54 }
 0x19e   :  { %v333_v55 = vpop.xlane.xlu0 %332 }
 0x19f   :  { %v334_v56 = vsub.f32 %v331_v50, %v333_v55 }
 0x1a1   :  { %v335_v57 = vmul.f32 1.442695, %v334_v56 }
 0x1a3   :  { %475 = vpow2.f32 %v335_v57 }
 0x1a6   :  { %v316_v60 = vpop.xlane.xlu0 %315 }
 0x1a7   :  { %v317_v61 = vmax.f32 %v316_v60, 1e-24 }
 0x1a9   :  { %v476_v58 = vpop.eup %475  ;;  %477 = vrsqrt.f32 %v317_v61  ;;  %vm324_vm6 = vweird.f32 %v317_v61 }
 0x1aa   :  { %v337_v59 = vsel %vm310_vm3, %v476_v58, 0.0 }
 0x1ab   :  { %338 = vadd.xlane.f32.xlu1 %v337_v59 }
 0x1af   :  { %v478_v62 = vpop.eup %477 }
 0x1b0   :  { %v319_v63 = vmul.f32 %v478_v62, %v317_v61  ;;  %vm325_vm5 = vweird.f32 %v478_v62 }
 0x1b1   :  { %vm326_vm7 = vmor %vm324_vm6, %vm325_vm5 }
 0x1b2   :  { %v320_v0 = vmul.f32 %v478_v62, %v319_v63 }
 0x1b4   :  { %v321_v1 = vmul.f32 0.5, %v320_v0 }
 0x1b6   :  { %v322_v2 = vsub.f32 1.5, %v321_v1 }
 0x1b8   :  { %v323_v4 = vmul.f32 %v478_v62, %v322_v2 }
 0x1ba   :  { %v327_v5 = vsel %vm326_vm7, %v478_v62, %v323_v4 }
 0x1bb   :  { %v328_v7 = vmul.f32 %v327_v5, %v302_v49 }
 0x21e   :  { %v339_v3 = vpop.xlane.xlu1 %338 }
 0x21f   :  { %479 = vrcp.f32 %v339_v3 }
 0x225   :  { %v480_v6 = vpop.eup %479 }
 0x226   :  { %v341_v8 = vmul.f32 %v480_v6, %v337_v59 }
 0x228   :  { %v342_v9 = vsel %vm307_vm4, %v328_v7, %v341_v8 }
 0x229   :  { %343 = vst [vmem:[#allocation10] sm:$0xff] %v342_v9 }
 0x22a   :  { %354 = dma.vmem_to_hbm [thread:$0]  %s350_s15, 128, %s352_s18, [#allocation4]  }
 0x22b   :  { %607 = dma.done.wait [#allocation4], 128  }
 0x22c   :  { %608 = vsyncadd [#allocation4], 4294967168 }
 0x22d   :  { %359 = vsyncpa [#allocation3], 1 }
 0x22e   :  { %360 = vsyncpa [#allocation6], 1 }
 0x22f   :  { %361 = vsyncpa [#allocation9], 1 }
 0x230   :  { %362 = vsyncpa [#allocation4], 1 }

</bundles_post_ra>
